<compile_context>
chip_gen: v7x
topology: tpu7x:2x2x1
jax: 0.10.0
libtpu: 0.0.40
codegen_flags: <defaults>
</compile_context>

<pallas_src>
import jax
import jax.numpy as jnp
from jax import lax
from jax.experimental import pallas as pl
from jax.experimental.pallas import tpu as pltpu


def _round_up(x, m):
    return ((x + m - 1) // m) * m


# ----------------------------------------------------------------------------- kernels
def input_proj_kernel(emb_ref, w_ih_ref, b_ref, xp_ref):
    # (TT*Bp, E) @ (E, 4Hp) + (1, 4Hp) -> (TT*Bp, 4Hp).  Bias folded here, off the serial path.
    xp_ref[...] = (
        jnp.dot(emb_ref[...], w_ih_ref[...], preferred_element_type=jnp.float32)
        + b_ref[...]
    )


def lstm_recurrence_kernel(xp_ref,      # (Bt, 4Hp)  precomputed x@W_ih + b for this timestep
                           w_hh_ref,    # (Hp, 4Hp)  hidden->gates weight (padded, transposed)
                           w_out_ref,   # (Hp, OUTP) final linear weight (padded, transposed)
                           b_out_ref,   # (1, OUTP)  final linear bias (lane 0 real)
                           out_ref,     # (Bt, OUTP) sigmoid(logit) slab (col 0 real)
                           h_scr,       # VMEM (Bt, Hp) hidden state, persists across grid steps
                           c_scr):      # VMEM (Bt, Hp) cell state
    t = pl.program_id(1)
    Hp = h_scr.shape[1]

    @pl.when(t == 0)
    def _():
        h_scr[...] = jnp.zeros_like(h_scr)
        c_scr[...] = jnp.zeros_like(c_scr)

    # Only the hidden->gates matmul remains on the serial critical path.
    gates = xp_ref[...] + jnp.dot(h_scr[...], w_hh_ref[...],
                                  preferred_element_type=jnp.float32)       # (Bt, 4Hp)
    i = jax.nn.sigmoid(gates[:, 0 * Hp:1 * Hp])   # 128-lane-aligned slices
    f = jax.nn.sigmoid(gates[:, 1 * Hp:2 * Hp])
    g = jnp.tanh(gates[:, 2 * Hp:3 * Hp])
    o = jax.nn.sigmoid(gates[:, 3 * Hp:4 * Hp])
    c_new = f * c_scr[...] + i * g
    c_scr[...] = c_new
    h_scr[...] = o * jnp.tanh(c_new)

    @pl.when(t == pl.num_programs(1) - 1)
    def _():
        logit = (jnp.dot(h_scr[...], w_out_ref[...], preferred_element_type=jnp.float32)
                 + b_out_ref[...])
        out_ref[...] = jax.nn.sigmoid(logit)


# ----------------------------------------------------------------------------- wrapper
def simple_discriminator_forward(tokens, params):
    """tokens: (B, T) int32 -> (B, 1) float32 probabilities (matches the PyTorch forward)."""
    B, T = tokens.shape
    emb_table = params["embedding"]
    E = emb_table.shape[1]
    H = params["w_hh"].shape[1]          # torch w_hh: (4H, H)

    LANE, SUB = 128, 8
    Hp = _round_up(H, LANE)              # lane-aligned hidden size
    OUTP = LANE                          # lane-dense output slab (column 0 holds the real logit)

    # ---- batch padding / tiling (sublane-aligned; tiles split across v7x cores) --------
    Bp = _round_up(B, SUB)
    b_tile = min(Bp, 256)
    Bp = _round_up(Bp, b_tile)
    NB = Bp // b_tile

    # ---- lane-pad parameters (zero pad lanes keep padded h/c columns exactly 0) --------
    # NOTE: on v6e/v7x, casting emb / weights to bfloat16 here (keeping preferred_element_type
    # and the gate math in f32) doubles MXU throughput and halves VMEM/HBM bytes; kept f32 to
    # match PyTorch fp32 numerics exactly.
    def pad_gate_cols(w):                # (rows, 4H) -> (rows, 4*Hp), gate order [i, f, g, o]
        r = w.shape[0]
        out = jnp.zeros((r, 4, Hp), jnp.float32)
        out = out.at[:, :, :H].set(w.reshape(r, 4, H).astype(jnp.float32))
        return out.reshape(r, 4 * Hp)

    w_ih_p = pad_gate_cols(params["w_ih"].T)                                   # (E, 4Hp)
    w_hh_p = jnp.zeros((Hp, 4 * Hp), jnp.float32).at[:H, :].set(
        pad_gate_cols(params["w_hh"].T))                                       # (Hp, 4Hp)
    b_p = pad_gate_cols((params["b_ih"] + params["b_hh"]).reshape(1, 4 * H))   # (1, 4Hp)
    w_out_p = jnp.zeros((Hp, OUTP), jnp.float32).at[:H, 0].set(
        params["w_lin"][0].astype(jnp.float32))                                # (Hp, OUTP)
    b_out_p = jnp.zeros((1, OUTP), jnp.float32).at[0, 0].set(
        params["b_lin"][0].astype(jnp.float32))                                # (1, OUTP)

    # ---- embedding gather (JAX glue) directly time-major: no materialized transpose ----
    tok_p = jnp.zeros((Bp, T), tokens.dtype).at[:B, :].set(tokens)
    emb_tm = jnp.take(emb_table, tok_p.T, axis=0).astype(jnp.float32)          # (T, Bp, E)
    emb2d = emb_tm.reshape(T * Bp, E)                                          # row = t*Bp + b

    # ---- kernel 1: hoisted input projection, pipelined over T tiles ---------------------
    TT = min(T, 64)                        # timesteps per projection tile
    Tpad = _round_up(T, TT)
    if Tpad != T:
        emb2d = jnp.pad(emb2d, ((0, (Tpad - T) * Bp), (0, 0)))

    x_proj = pl.pallas_call(
        input_proj_kernel,
        out_shape=jax.ShapeDtypeStruct((Tpad * Bp, 4 * Hp), jnp.float32),
        grid_spec=pltpu.PrefetchScalarGridSpec(
            num_scalar_prefetch=0,
            grid=(Tpad // TT,),
            in_specs=[
                pl.BlockSpec((TT * Bp, E), lambda i: (i, 0)),
                pl.BlockSpec((E, 4 * Hp), lambda i: (0, 0)),
                pl.BlockSpec((1, 4 * Hp), lambda i: (0, 0)),
            ],
            out_specs=pl.BlockSpec((TT * Bp, 4 * Hp), lambda i: (i, 0)),
        ),
        compiler_params=pltpu.CompilerParams(dimension_semantics=("parallel",)),
    )(emb2d, w_ih_p, b_p)

    # ---- kernel 2: serial LSTM recurrence, one streamed timestep per grid step ----------
    out_p = pl.pallas_call(
        lstm_recurrence_kernel,
        out_shape=jax.ShapeDtypeStruct((Bp, OUTP), jnp.float32),
        grid_spec=pltpu.PrefetchScalarGridSpec(
            num_scalar_prefetch=0,
            grid=(NB, T),
            in_specs=[
                # x_proj rows are (t, b)-major; block index for (batch tile b, time t):
                pl.BlockSpec((b_tile, 4 * Hp), lambda b, t: (t * NB + b, 0)),
                pl.BlockSpec((Hp, 4 * Hp), lambda b, t: (0, 0)),
                pl.BlockSpec((Hp, OUTP), lambda b, t: (0, 0)),
                pl.BlockSpec((1, OUTP), lambda b, t: (0, 0)),
            ],
            out_specs=pl.BlockSpec((b_tile, OUTP), lambda b, t: (b, 0)),
            scratch_shapes=[
                pltpu.VMEM((b_tile, Hp), jnp.float32),   # h
                pltpu.VMEM((b_tile, Hp), jnp.float32),   # c
            ],
        ),
        compiler_params=pltpu.CompilerParams(
            dimension_semantics=("parallel", "arbitrary")),
    )(x_proj, w_hh_p, w_out_p, b_out_p)

    return out_p[:B, :1]


# ----------------------------------------------------------------------------- params / reference
def init_params(key, vocab_size, embedding_dim, hidden_dim):
    ks = jax.random.split(key, 7)
    bound = 1.0 / jnp.sqrt(jnp.float32(hidden_dim))
    return {
        # nn.Embedding: N(0, 1)
        "embedding": jax.random.normal(ks[0], (vocab_size, embedding_dim), jnp.float32),
        # nn.LSTM: U(-1/sqrt(H), 1/sqrt(H)); torch shapes (4H, E), (4H, H), (4H,), (4H,)
        "w_ih": jax.random.uniform(ks[1], (4 * hidden_dim, embedding_dim),
                                   jnp.float32, -bound, bound),
        "w_hh": jax.random.uniform(ks[2], (4 * hidden_dim, hidden_dim),
                                   jnp.float32, -bound, bound),
        "b_ih": jax.random.uniform(ks[3], (4 * hidden_dim,), jnp.float32, -bound, bound),
        "b_hh": jax.random.uniform(ks[4], (4 * hidden_dim,), jnp.float32, -bound, bound),
        # nn.Linear(H, 1): U(-1/sqrt(H), 1/sqrt(H)); torch shapes (1, H), (1,)
        "w_lin": jax.random.uniform(ks[5], (1, hidden_dim), jnp.float32, -bound, bound),
        "b_lin": jax.random.uniform(ks[6], (1,), jnp.float32, -bound, bound),
    }


def _reference_forward(tokens, params):
    """Pure-JAX reference mirroring torch nn.LSTM / nn.Linear semantics."""
    B, T = tokens.shape
    H = params["w_hh"].shape[1]
    hi = lax.Precision.HIGHEST
    emb = jnp.take(params["embedding"], tokens, axis=0)                     # (B, T, E)
    b = params["b_ih"] + params["b_hh"]
    h = jnp.zeros((B, H), jnp.float32)
    c = jnp.zeros((B, H), jnp.float32)
    for t in range(T):
        gates = (jnp.dot(emb[:, t, :], params["w_ih"].T, precision=hi)
                 + jnp.dot(h, params["w_hh"].T, precision=hi) + b)
        i, f, g, o = jnp.split(gates, 4, axis=1)
        i, f, o = jax.nn.sigmoid(i), jax.nn.sigmoid(f), jax.nn.sigmoid(o)
        g = jnp.tanh(g)
        c = f * c + i * g
        h = o * jnp.tanh(c)
    return jax.nn.sigmoid(jnp.dot(h, params["w_lin"].T, precision=hi) + params["b_lin"])


# ----------------------------------------------------------------------------- main
if __name__ == "__main__":
    VOCAB, EMB, HID = 128, 32, 32
    B, T = 2, 8

    key = jax.random.PRNGKey(0)
    pkey, dkey = jax.random.split(key)
    params = init_params(pkey, VOCAB, EMB, HID)
    tokens = jax.random.randint(dkey, (B, T), 0, VOCAB, dtype=jnp.int32)

    probs = simple_discriminator_forward(tokens, params)
    jax.block_until_ready(probs)

    assert probs.shape == (B, 1)
    assert bool(jnp.all((probs >= 0.0) & (probs <= 1.0)))

    ref = _reference_forward(tokens, params)
    assert bool(jnp.allclose(probs, ref, atol=1e-3, rtol=1e-3))

    print("KERNEL_OK")
</pallas_src>

<mosaic_0001>
module attributes {stable_mosaic.version = 11 : i64} {
  func.func @input_proj_kernel(%arg0: i32, %arg1: memref<64x32xf32, #tpu.memory_space<vmem>>, %arg2: memref<32x512xf32, #tpu.memory_space<vmem>>, %arg3: memref<1x512xf32, #tpu.memory_space<vmem>>, %arg4: memref<64x512xf32, #tpu.memory_space<vmem>>) attributes {dimension_semantics = [#tpu.dimension_semantics<parallel>], iteration_bounds = array<i64: 1>, scalar_prefetch = 0 : i64, scratch_operands = 0 : i64, tpu.core_type = #tpu.core_type<tc>, window_params = [{transform_indices = @transform_0, window_bounds = array<i64: 64, 32>}, {pipeline_mode = #tpu.pipeline_mode<synchronous>, transform_indices = @transform_1, window_bounds = array<i64: 32, 512>}, {pipeline_mode = #tpu.pipeline_mode<synchronous>, transform_indices = @transform_2, window_bounds = array<i64: 1, 512>}, {transform_indices = @transform_3, window_bounds = array<i64: 64, 512>}]} {
    %c0 = arith.constant 0 : index
    %c0_0 = arith.constant 0 : index
    %0 = vector.load %arg1[%c0, %c0_0] : memref<64x32xf32, #tpu.memory_space<vmem>>, vector<64x32xf32>
    %c0_1 = arith.constant 0 : index
    %c0_2 = arith.constant 0 : index
    %1 = vector.load %arg2[%c0_1, %c0_2] : memref<32x512xf32, #tpu.memory_space<vmem>>, vector<32x512xf32>
    %cst = arith.constant dense<0.000000e+00> : vector<64x512xf32>
    %2 = tpu.matmul %0, %1, %cst {dimension_numbers = #tpu.dot_dimension_numbers<[1], [0], [0], [1], [0, 0, 1, 1], [], []>} : vector<64x32xf32>, vector<32x512xf32>, vector<64x512xf32> -> vector<64x512xf32>
    %c0_3 = arith.constant 0 : index
    %c0_4 = arith.constant 0 : index
    %3 = vector.load %arg3[%c0_3, %c0_4] : memref<1x512xf32, #tpu.memory_space<vmem>>, vector<1x512xf32>
    %4 = vector.broadcast %3 : vector<1x512xf32> to vector<64x512xf32>
    %5 = arith.addf %2, %4 : vector<64x512xf32>
    %c0_5 = arith.constant 0 : index
    %c0_6 = arith.constant 0 : index
    %6 = vector.load %arg4[%c0_5, %c0_6] : memref<64x512xf32, #tpu.memory_space<vmem>>, vector<64x512xf32>
    tpu.vector_store %arg4[%c0_5, %c0_6], %5 {strides = array<i32>} : memref<64x512xf32, #tpu.memory_space<vmem>>, vector<64x512xf32>,
    return
  }
  func.func @transform_0(%arg0: i32) -> (i32, i32) {
    %c0_i32 = arith.constant 0 : i32
    %c0_i32_0 = arith.constant 0 : i32
    return %arg0, %c0_i32 : i32, i32
  }
  func.func @transform_1(%arg0: i32) -> (i32, i32) {
    %c0_i32 = arith.constant 0 : i32
    %c0_i32_0 = arith.constant 0 : i32
    %c0_i32_1 = arith.constant 0 : i32
    return %c0_i32, %c0_i32_0 : i32, i32
  }
  func.func @transform_2(%arg0: i32) -> (i32, i32) {
    %c0_i32 = arith.constant 0 : i32
    %c0_i32_0 = arith.constant 0 : i32
    %c0_i32_1 = arith.constant 0 : i32
    return %c0_i32, %c0_i32_0 : i32, i32
  }
  func.func @transform_3(%arg0: i32) -> (i32, i32) {
    %c0_i32 = arith.constant 0 : i32
    %c0_i32_0 = arith.constant 0 : i32
    return %arg0, %c0_i32 : i32, i32
  }
}

</mosaic_0001>

<bundles_post_ra>
// kernel: tpu_custom_call.1
= control target key start
LH: loop header
LB: loop body
LE: loop exit
PB: predicated region body
PF: predicated region fallthrough
CT: control target
= control target key end

     0   :  { %8 = vsyncpa [#allocation3], 0  ;;  %s614_s0 = inlined_call_operand.vmem [shape: f32[64,32], index: 0, kind: input, shape index: {}]   ;;  %s615_s1 = inlined_call_operand.hbm [shape: f32[32,512], index: 1, kind: input, shape index: {}]   ;;  %s616_s2 = inlined_call_operand.vmem [shape: f32[1,512], index: 2, kind: input, shape index: {}]   ;;  %s617_s3 = inlined_call_operand.hbm [shape: f32[64,512], index: 3, kind: output, shape index: {}]  }
   0x1   :  { %9 = vsyncpa [#allocation4], 0  ;;  %s460_s12 = smov [#allocation2]   ;;  %s412_s16 = scalar_lea.hbm %s615_s1, 2048 }
   0x2   :  { %s17_s13 = sshll.u32 %s460_s12, 4  ;;  %p413_p0 = scmp.ne.s32.totalorder %s615_s1, %s412_s16  ;;  %s18_s13 = int_to_ptr.vmem [resolvable:$true] %s17_s13 }
   0x3   :  { %p416_p1 = scmp.lt.u32.totalorder %s412_s16, %s615_s1 }
   0x5   :  { %p418_p2 = pnand %p416_p1, %p413_p0 }
   0x7   :  { %421 = shalt.err (!%p418_p2)
}
   0x8   :  { %s422_s21 = scalar_lea.vmem %s18_s13, 2048  ;;  %p427_p4 = scmp.lt.s32.totalorder %s18_s13, %s18_s13 }
   0x9   :  { %p423_p3 = scmp.ne.s32.totalorder %s18_s13, %s422_s21  ;;  %p428_p5 = scmp.lt.s32.totalorder %s422_s21, %s422_s21 }
   0xb   :  { %p429_p6 = por %p428_p5, %p427_p4 }
   0xd   :  { %p430_p7 = pnand %p429_p6, %p423_p3 }
   0xf   :  { %433 = shalt.err (!%p430_p7)
}
  0x10   :  { %s461_s22 = smov 512   ;;  %s462_s23 = smov 32  }
  0x11   :  { %23 = dma.hbm_to_vmem [thread:$0]  %s615_s1, 2048, %s18_s13, [#allocation3], %s461_s22, %s461_s22, %s462_s23  }
  0x12   :  { %456 = dma.done.wait [#allocation3], 2048  }
  0x13   :  { %457 = vsyncadd [#allocation3], 4294965248  ;;  %v463_v0 = vmov 0.0   ;;  %v38_v1 = vld [vmem:[#allocation2 + $0x8] sm:$0xff]  ;;  %v40_v3 = vld [vmem:[#allocation2 + $0x18] sm:$0xff]  ;;  %vm75_vm0 = vcmask 261120   ;;  %v55_v33 = vlaneseq }
  0x14   :  { %164 = vmatprep.mubr.f32.mxu0 %v463_v0  ;;  %277 = vmatprep.mubr.f32.mxu1 %v463_v0  ;;  %v42_v2 = vld [vmem:[#allocation2 + $0x28] sm:$0xff]  ;;  %v44_v5 = vld [vmem:[#allocation2 + $0x38] sm:$0xff]  ;;  %v37_v6 = vld [vmem:[#allocation2] sm:$0xff] }
  0x15   :  { %v391_v4 = vpack.c.bf16 %v42_v2, %v38_v1  ;;  %v41_v7 = vld [vmem:[#allocation2 + $0x20] sm:$0xff]  ;;  %v399_v8 = vpack.c.bf16 %v44_v5, %v40_v3  ;;  %v39_v10 = vld [vmem:[#allocation2 + $0x10] sm:$0xff]  ;;  %v46_v12 = vld [vmem:[#allocation2 + $0x48] sm:$0xff]  ;;  %v56_v34 = vshrl.u32 %v55_v33, 7 }
  0x16   :  { %v393_v9 = vpack.c.bf16 %v41_v7, %v37_v6  ;;  %v43_v11 = vld [vmem:[#allocation2 + $0x30] sm:$0xff]  ;;  %v50_v14 = vld [vmem:[#allocation2 + $0x68] sm:$0xff]  ;;  %v48_v15 = vld [vmem:[#allocation2 + $0x58] sm:$0xff] }
  0x17   :  { %392 = vmatprep.subr.bf16.mxu0 %v391_v4  ;;  %v401_v13 = vpack.c.bf16 %v43_v11, %v39_v10  ;;  %v52_v16 = vld [vmem:[#allocation2 + $0x78] sm:$0xff]  ;;  %400 = vmatprep.subr.bf16.mxu1 %v399_v8  ;;  %v395_v17 = vpack.c.bf16 %v50_v14, %v46_v12  ;;  %v45_v19 = vld [vmem:[#allocation2 + $0x40] sm:$0xff]  ;;  %v47_v21 = vld [vmem:[#allocation2 + $0x50] sm:$0xff]  ;;  %v57_v35 = vsub.s32 0, %v56_v34  ;;  %v65_v37 = vsub.s32 2, %v56_v34 }
  0x18   :  { %394 = vmatpush1.bf16.msra.mxu0 %v393_v9  ;;  %v403_v18 = vpack.c.bf16 %v52_v16, %v48_v15  ;;  %v49_v20 = vld [vmem:[#allocation2 + $0x60] sm:$0xff]  ;;  %v51_v23 = vld [vmem:[#allocation2 + $0x70] sm:$0xff]  ;;  %v30_v26 = vld [vmem:[%s614_s0 + $0x8] sm:$0xff]  ;;  %v61_v38 = vsub.s32 1, %v56_v34  ;;  %v69_v39 = vsub.s32 3, %v56_v34 }
  0x19   :  { %402 = vmatpush1.bf16.msra.mxu1 %v401_v13  ;;  %v397_v22 = vpack.c.bf16 %v49_v20, %v45_v19  ;;  %396 = vmatprep.subr.bf16.mxu0 %v395_v17  ;;  %v405_v24 = vpack.c.bf16 %v51_v23, %v47_v21  ;;  %v29_v25 = vld [vmem:[%s614_s0] sm:$0xff]  ;;  %v31_v27 = vld [vmem:[%s614_s0 + $0x10] sm:$0xff]  ;;  %v32_v28 = vld [vmem:[%s614_s0 + $0x18] sm:$0xff] }
  0x1a   :  { %404 = vmatprep.subr.bf16.mxu1 %v403_v18  ;;  %v33_v29 = vld [vmem:[%s614_s0 + $0x20] sm:$0xff]  ;;  %v34_v30 = vld [vmem:[%s614_s0 + $0x28] sm:$0xff]  ;;  %v35_v31 = vld [vmem:[%s614_s0 + $0x30] sm:$0xff] }
  0x1b   :  { %v36_v32 = vld [vmem:[%s614_s0 + $0x38] sm:$0xff]  ;;  %v53_v36 = vld [vmem:[%s616_s2] sm:$0xf]  ;;  %s464_s0 = smov [#allocation5]  }
  0x1c   :  { %398 = vmatpush1.bf16.msra.mxu0 %v397_v22  ;;  %v559_v40 = vrot.slane %v53_v36, %v57_v35  ;;  %v561_v41 = vrot.slane %v53_v36, %v65_v37  ;;  %v563_v42 = vrot.slane %v53_v36, %v61_v38  ;;  %v565_v43 = vrot.slane %v53_v36, %v69_v39  ;;  %s363_s2 = sshll.u32 %s464_s0, 4  ;;  %s364_s2 = int_to_ptr.vmem [resolvable:$true] %s363_s2 }
  0x1d   :  { %406 = vmatpush1.bf16.msra.mxu1 %v405_v24  ;;  %s434_s16 = scalar_lea.vmem %s364_s2, 4096  ;;  %p439_p9 = scmp.lt.s32.totalorder %s364_s2, %s364_s2 }
  0x1e   :  { %p435_p8 = scmp.ne.s32.totalorder %s364_s2, %s434_s16  ;;  %p440_p10 = scmp.lt.s32.totalorder %s434_s16, %s434_s16 }
  0x1f   :  { %375 = vmatmul.mubr.msk.f32.vlgmr.msra.gmra.mrb[0].mxu0 %vm75_vm0, %v29_v25 }
  0x20   :  { %383 = vmatmul.mubr.msk.f32.vlgmr.msra.gmra.mrb[0].mxu1 %vm75_vm0, %v29_v25  ;;  %170 = vmatprep.mubr.f32.mxu0 %v463_v0  ;;  %p441_p11 = por %p440_p10, %p439_p9 }
  0x21   :  { %283 = vmatprep.mubr.f32.mxu1 %v463_v0 }
  0x22   :  { %p442_p12 = pnand %p441_p11, %p435_p8 }
  0x23   :  { %376 = vmatmul.mubr.msk.f32.gmra.mrb[2].mxu0 %vm75_vm0, %v30_v26 }
  0x24   :  { %384 = vmatmul.mubr.msk.f32.gmra.mrb[2].mxu1 %vm75_vm0, %v30_v26  ;;  %176 = vmatprep.mubr.f32.mxu0 %v463_v0 }
  0x25   :  { %289 = vmatprep.mubr.f32.mxu1 %v463_v0 }
  0x27   :  { %377 = vmatmul.mubr.msk.f32.gmra.mrb[4].mxu0 %vm75_vm0, %v31_v27 }
  0x28   :  { %385 = vmatmul.mubr.msk.f32.gmra.mrb[4].mxu1 %vm75_vm0, %v31_v27  ;;  %182 = vmatprep.mubr.f32.mxu0 %v463_v0 }
  0x29   :  { %295 = vmatprep.mubr.f32.mxu1 %v463_v0 }
  0x2b   :  { %378 = vmatmul.mubr.msk.f32.gmra.mrb[6].mxu0 %vm75_vm0, %v32_v28 }
  0x2c   :  { %386 = vmatmul.mubr.msk.f32.gmra.mrb[6].mxu1 %vm75_vm0, %v32_v28  ;;  %188 = vmatprep.mubr.f32.mxu0 %v463_v0 }
  0x2d   :  { %301 = vmatprep.mubr.f32.mxu1 %v463_v0 }
  0x2f   :  { %379 = vmatmul.mubr.msk.f32.gmra.mrb[8].mxu0 %vm75_vm0, %v33_v29 }
  0x30   :  { %387 = vmatmul.mubr.msk.f32.gmra.mrb[8].mxu1 %vm75_vm0, %v33_v29  ;;  %194 = vmatprep.mubr.f32.mxu0 %v463_v0 }
  0x31   :  { %307 = vmatprep.mubr.f32.mxu1 %v463_v0 }
  0x33   :  { %380 = vmatmul.mubr.msk.f32.gmra.mrb[10].mxu0 %vm75_vm0, %v34_v30 }
  0x34   :  { %388 = vmatmul.mubr.msk.f32.gmra.mrb[10].mxu1 %vm75_vm0, %v34_v30  ;;  %200 = vmatprep.mubr.f32.mxu0 %v463_v0 }
  0x35   :  { %313 = vmatprep.mubr.f32.mxu1 %v463_v0 }
  0x37   :  { %381 = vmatmul.mubr.msk.f32.gmra.mrb[12].mxu0 %vm75_vm0, %v35_v31 }
  0x38   :  { %389 = vmatmul.mubr.msk.f32.gmra.mrb[12].mxu1 %vm75_vm0, %v35_v31  ;;  %206 = vmatprep.mubr.f32.mxu0 %v463_v0 }
  0x39   :  { %319 = vmatprep.mubr.f32.mxu1 %v463_v0 }
  0x3b   :  { %382 = vmatmul.mubr.msk.f32.gmra.mrb[14].mxu0 %vm75_vm0, %v36_v32 }
  0x3c   :  { %390 = vmatmul.mubr.msk.f32.gmra.mrb[14].mxu1 %vm75_vm0, %v36_v32 }
  0xf2   :  { %v166_v44 = vpop.f32.mrb[0].mxu0 }
  0xf3   :  { %v167_v45 = vadd.f32 %v166_v44, %v559_v40  ;;  %v279_v46 = vpop.f32.mrb[0].mxu1  ;;  %v168_v47 = vpop.f32.mrb[1].mxu0 }
  0xf4   :  { %v280_v48 = vadd.f32 %v279_v46, %v561_v41  ;;  %v169_v49 = vadd.f32 %v168_v47, %v563_v42  ;;  %v281_v50 = vpop.f32.mrb[1].mxu1 }
  0xf5   :  { %326 = vst [vmem:[#allocation5] sm:$0xff] %v167_v45  ;;  %v282_v51 = vadd.f32 %v281_v50, %v565_v43 }
  0xf6   :  { %328 = vst [vmem:[#allocation5 + $0x10] sm:$0xff] %v280_v48  ;;  %327 = vst [vmem:[#allocation5 + $0x8] sm:$0xff] %v169_v49  ;;  %v172_v52 = vpop.f32.mrb[2].mxu0 }
  0xf7   :  { %329 = vst [vmem:[#allocation5 + $0x18] sm:$0xff] %v282_v51  ;;  %v173_v53 = vadd.f32 %v172_v52, %v559_v40  ;;  %v285_v54 = vpop.f32.mrb[2].mxu1  ;;  %v174_v55 = vpop.f32.mrb[3].mxu0 }
  0xf8   :  { %v286_v56 = vadd.f32 %v285_v54, %v561_v41  ;;  %v175_v57 = vadd.f32 %v174_v55, %v563_v42  ;;  %v287_v58 = vpop.f32.mrb[3].mxu1 }
  0xf9   :  { %330 = vst [vmem:[#allocation5 + $0x20] sm:$0xff] %v173_v53  ;;  %v288_v59 = vadd.f32 %v287_v58, %v565_v43 }
  0xfa   :  { %332 = vst [vmem:[#allocation5 + $0x30] sm:$0xff] %v286_v56  ;;  %331 = vst [vmem:[#allocation5 + $0x28] sm:$0xff] %v175_v57  ;;  %v178_v60 = vpop.f32.mrb[4].mxu0 }
  0xfb   :  { %333 = vst [vmem:[#allocation5 + $0x38] sm:$0xff] %v288_v59  ;;  %v179_v61 = vadd.f32 %v178_v60, %v559_v40  ;;  %v291_v62 = vpop.f32.mrb[4].mxu1  ;;  %v180_v63 = vpop.f32.mrb[5].mxu0 }
  0xfc   :  { %v292_v0 = vadd.f32 %v291_v62, %v561_v41  ;;  %v181_v1 = vadd.f32 %v180_v63, %v563_v42  ;;  %v293_v2 = vpop.f32.mrb[5].mxu1 }
  0xfd   :  { %334 = vst [vmem:[#allocation5 + $0x40] sm:$0xff] %v179_v61  ;;  %v294_v3 = vadd.f32 %v293_v2, %v565_v43 }
  0xfe   :  { %336 = vst [vmem:[#allocation5 + $0x50] sm:$0xff] %v292_v0  ;;  %335 = vst [vmem:[#allocation5 + $0x48] sm:$0xff] %v181_v1  ;;  %v184_v4 = vpop.f32.mrb[6].mxu0 }
  0xff   :  { %337 = vst [vmem:[#allocation5 + $0x58] sm:$0xff] %v294_v3  ;;  %v185_v5 = vadd.f32 %v184_v4, %v559_v40  ;;  %v297_v6 = vpop.f32.mrb[6].mxu1  ;;  %v186_v7 = vpop.f32.mrb[7].mxu0 }
 0x100   :  { %v298_v8 = vadd.f32 %v297_v6, %v561_v41  ;;  %v187_v9 = vadd.f32 %v186_v7, %v563_v42  ;;  %v299_v10 = vpop.f32.mrb[7].mxu1 }
 0x101   :  { %338 = vst [vmem:[#allocation5 + $0x60] sm:$0xff] %v185_v5  ;;  %v300_v11 = vadd.f32 %v299_v10, %v565_v43 }
 0x102   :  { %340 = vst [vmem:[#allocation5 + $0x70] sm:$0xff] %v298_v8  ;;  %339 = vst [vmem:[#allocation5 + $0x68] sm:$0xff] %v187_v9  ;;  %v190_v12 = vpop.f32.mrb[8].mxu0 }
 0x103   :  { %341 = vst [vmem:[#allocation5 + $0x78] sm:$0xff] %v300_v11  ;;  %v191_v13 = vadd.f32 %v190_v12, %v559_v40  ;;  %v303_v14 = vpop.f32.mrb[8].mxu1  ;;  %v192_v15 = vpop.f32.mrb[9].mxu0 }
 0x104   :  { %v304_v16 = vadd.f32 %v303_v14, %v561_v41  ;;  %v193_v17 = vadd.f32 %v192_v15, %v563_v42  ;;  %v305_v18 = vpop.f32.mrb[9].mxu1 }
 0x105   :  { %342 = vst [vmem:[#allocation5 + $0x80] sm:$0xff] %v191_v13  ;;  %v306_v19 = vadd.f32 %v305_v18, %v565_v43 }
 0x106   :  { %344 = vst [vmem:[#allocation5 + $0x90] sm:$0xff] %v304_v16  ;;  %343 = vst [vmem:[#allocation5 + $0x88] sm:$0xff] %v193_v17  ;;  %v196_v20 = vpop.f32.mrb[10].mxu0 }
 0x107   :  { %345 = vst [vmem:[#allocation5 + $0x98] sm:$0xff] %v306_v19  ;;  %v197_v21 = vadd.f32 %v196_v20, %v559_v40  ;;  %v309_v22 = vpop.f32.mrb[10].mxu1  ;;  %v198_v23 = vpop.f32.mrb[11].mxu0 }
 0x108   :  { %v310_v24 = vadd.f32 %v309_v22, %v561_v41  ;;  %v199_v25 = vadd.f32 %v198_v23, %v563_v42  ;;  %v311_v26 = vpop.f32.mrb[11].mxu1 }
 0x109   :  { %346 = vst [vmem:[#allocation5 + $0xa0] sm:$0xff] %v197_v21  ;;  %v312_v27 = vadd.f32 %v311_v26, %v565_v43 }
 0x10a   :  { %348 = vst [vmem:[#allocation5 + $0xb0] sm:$0xff] %v310_v24  ;;  %347 = vst [vmem:[#allocation5 + $0xa8] sm:$0xff] %v199_v25  ;;  %v202_v28 = vpop.f32.mrb[12].mxu0 }
 0x10b   :  { %349 = vst [vmem:[#allocation5 + $0xb8] sm:$0xff] %v312_v27  ;;  %v203_v29 = vadd.f32 %v202_v28, %v559_v40  ;;  %v315_v30 = vpop.f32.mrb[12].mxu1  ;;  %v204_v31 = vpop.f32.mrb[13].mxu0 }
 0x10c   :  { %v316_v32 = vadd.f32 %v315_v30, %v561_v41  ;;  %v205_v33 = vadd.f32 %v204_v31, %v563_v42  ;;  %v317_v34 = vpop.f32.mrb[13].mxu1 }
 0x10d   :  { %350 = vst [vmem:[#allocation5 + $0xc0] sm:$0xff] %v203_v29  ;;  %v318_v35 = vadd.f32 %v317_v34, %v565_v43 }
 0x10e   :  { %352 = vst [vmem:[#allocation5 + $0xd0] sm:$0xff] %v316_v32  ;;  %351 = vst [vmem:[#allocation5 + $0xc8] sm:$0xff] %v205_v33  ;;  %v208_v36 = vpop.f32.mrb[14].mxu0 }
 0x10f   :  { %353 = vst [vmem:[#allocation5 + $0xd8] sm:$0xff] %v318_v35  ;;  %v209_v37 = vadd.f32 %v208_v36, %v559_v40  ;;  %v321_v38 = vpop.f32.mrb[14].mxu1  ;;  %v210_v39 = vpop.f32.mrb[15].mxu0 }
 0x110   :  { %v322_v44 = vadd.f32 %v321_v38, %v561_v41  ;;  %v211_v45 = vadd.f32 %v210_v39, %v563_v42  ;;  %v323_v46 = vpop.f32.mrb[15].mxu1 }
 0x111   :  { %354 = vst [vmem:[#allocation5 + $0xe0] sm:$0xff] %v209_v37  ;;  %v324_v47 = vadd.f32 %v323_v46, %v565_v43 }
 0x112   :  { %356 = vst [vmem:[#allocation5 + $0xf0] sm:$0xff] %v322_v44  ;;  %355 = vst [vmem:[#allocation5 + $0xe8] sm:$0xff] %v211_v45 }
 0x113   :  { %357 = vst [vmem:[#allocation5 + $0xf8] sm:$0xff] %v324_v47 }
 0x114   :  { %445 = shalt.err (!%p442_p12)
}
 0x115   :  { %s446_s19 = scalar_lea.hbm %s617_s3, 4096 }
 0x116   :  { %p447_p13 = scmp.ne.s32.totalorder %s617_s3, %s446_s19  ;;  %p450_p0 = scmp.lt.u32.totalorder %s446_s19, %s617_s3 }
 0x118   :  { %p452_p1 = pnand %p450_p0, %p447_p13 }
 0x11a   :  { %455 = shalt.err (!%p452_p1)
}
 0x11b   :  { %369 = dma.vmem_to_hbm [thread:$0]  %s364_s2, 4096, %s617_s3, [#allocation4], %s461_s22, %s461_s22, %s462_s23  }
 0x11c   :  { %458 = dma.done.wait [#allocation4], 4096  }
 0x11d   :  { %459 = vsyncadd [#allocation4], 4294963200 }
 0x11e   :  { %373 = vsyncpa [#allocation3], 1 }
 0x11f   :  { %374 = vsyncpa [#allocation4], 1 }

</bundles_post_ra>
